<compile_context>
chip_gen: v7x
topology: tpu7x:2x2x1
jax: 0.10.0
libtpu: 0.0.40
codegen_flags: <defaults>
</compile_context>

<pallas_src>
import numpy as np
import jax
import jax.numpy as jnp
from jax.experimental import pallas as pl
from jax.experimental.pallas import tpu as pltpu


def _round_up(n, m):
    return ((n + m - 1) // m) * m


def _classifier_kernel(x_ref, w1_ref, b1_ref, w2i_ref, b2i_ref, out_ref):
    # x_ref:    (TB, F0)          input fiber tile (bf16 or f32)
    # w1/b1:    (F0, H), (1, H)   first equivariant Linear (bias kept f32)
    # w2i/b2i:  (H, G),  (1, G)   fused [Fourier Linear @ inverse-Fourier basis]
    # out_ref:  (TB, G)           logits tile
    h = jnp.dot(x_ref[...], w1_ref[...], preferred_element_type=jnp.float32)
    h = jnp.maximum(h + b1_ref[...], 0.0)  # surrogate equivariant nonlinearity
    out_ref[...] = (
        jnp.dot(h.astype(w2i_ref.dtype), w2i_ref[...],
                preferred_element_type=jnp.float32)
        + b2i_ref[...]
    ).astype(out_ref.dtype)


def make_inverse_fourier_matrix(logits_max_freq, n_grid):
    """SO(2) inverse-Fourier basis sampled on n_grid equally spaced rotations.

    Rows: [1, sqrt(2)cos(th), sqrt(2)sin(th), ..., sqrt(2)cos(L th), sqrt(2)sin(L th)]
    Shape: (K, G) with K = 1 + 2*logits_max_freq.
    """
    theta = jnp.arange(n_grid, dtype=jnp.float32) * (2.0 * jnp.pi / n_grid)
    rows = [jnp.ones_like(theta)]
    for l in range(1, logits_max_freq + 1):
        rows.append(jnp.sqrt(2.0) * jnp.cos(l * theta))
        rows.append(jnp.sqrt(2.0) * jnp.sin(l * theta))
    return jnp.stack(rows, axis=0)


def prepare_sym_view_pair_params(w1, b1, w2, b2, ift, *, use_bf16=True,
                                 pad_logit_lanes=False):
    """One-time parameter prep (hoisted out of the per-call wrapper).

    Exact algebraic fusion: (h @ W2 + b2) @ IFT == h @ (W2 @ IFT) + b2 @ IFT.
    Fusion is done in f32, then (optionally) a single bf16 cast -- more accurate
    than quantizing W2 and IFT separately.
    """
    w2i = jnp.dot(w2.astype(jnp.float32), ift.astype(jnp.float32))   # (H, G)
    b2i = jnp.dot(b2.astype(jnp.float32), ift.astype(jnp.float32))   # (1, G)
    if pad_logit_lanes:  # lane-dense stores for large-G configs (v6e/v7x)
        G = ift.shape[1]
        Gp = _round_up(G, 128)
        w2i = jnp.pad(w2i, ((0, 0), (0, Gp - G)))
        b2i = jnp.pad(b2i, ((0, 0), (0, Gp - G)))
    mm_dtype = jnp.bfloat16 if use_bf16 else jnp.float32
    return (w1.astype(mm_dtype), b1.astype(jnp.float32),
            w2i.astype(mm_dtype), b2i.astype(jnp.float32))


def _forward(xp, w1c, b1c, w2ic, b2ic, *, tb_eff, single_buffer_weights):
    Bp, F0 = xp.shape
    H = w1c.shape[1]
    Gdim = w2ic.shape[1]

    def const_spec(shape):
        # Constant-index weight blocks: single-buffered (nothing to prefetch),
        # halving resident weight VMEM at production fiber widths.
        if single_buffer_weights:
            return pl.BlockSpec(shape, lambda i: (0, 0),
                                pipeline_mode=pl.Buffered(1))
        return pl.BlockSpec(shape, lambda i: (0, 0))

    isz = jnp.dtype(xp.dtype).itemsize
    cost = pl.CostEstimate(
        flops=2 * Bp * F0 * H + 2 * Bp * H * Gdim,
        transcendentals=0,
        bytes_accessed=(Bp * F0 * isz + F0 * H * isz + H * 4
                        + H * Gdim * isz + Gdim * 4 + Bp * Gdim * 4),
    )
    # Explicit VMEM budget: weights (+bias) + double-buffered x/out tiles, 2x slack.
    weight_bytes = (F0 * H + H * Gdim) * isz + (H + Gdim) * 4
    tile_bytes = tb_eff * (F0 * isz + Gdim * 4)
    vmem_limit = int(min(96 * 2**20,
                         max(32 * 2**20, 2 * (weight_bytes + 2 * tile_bytes))))

    return pl.pallas_call(
        _classifier_kernel,
        out_shape=jax.ShapeDtypeStruct((Bp, Gdim), jnp.float32),
        grid_spec=pltpu.PrefetchScalarGridSpec(
            num_scalar_prefetch=0,
            grid=(Bp // tb_eff,),
            in_specs=[
                pl.BlockSpec((tb_eff, F0), lambda i: (i, 0)),   # x batch tile
                const_spec((F0, H)),                            # W1 (resident)
                const_spec((1, H)),                             # b1
                const_spec((H, Gdim)),                          # fused W2 @ IFT
                const_spec((1, Gdim)),                          # fused b2 @ IFT
            ],
            out_specs=pl.BlockSpec((tb_eff, Gdim), lambda i: (i, 0)),
        ),
        compiler_params=pltpu.CompilerParams(
            dimension_semantics=("parallel",),
            vmem_limit_bytes=vmem_limit,
        ),
        cost_estimate=cost,
    )(xp, w1c, b1c, w2ic, b2ic)


def sym_view_pair_classifier_apply(x, params, *, n_logits=None, tb=256):
    """logits = relu(x @ W1 + b1) @ (W2 @ IFT) + b2 @ IFT  ->  (B, n_logits)."""
    w1c, b1c, w2ic, b2ic = params
    B, F0 = x.shape
    assert w1c.shape[0] == F0
    Gdim = w2ic.shape[1]
    if n_logits is None:
        n_logits = Gdim
    mm_dtype = w1c.dtype

    # Adaptive batch tile: never pad a small batch up to a huge tile; keep the
    # "parallel" batch axis at >= 2 grid steps when the batch allows it (v7x
    # dual-TensorCore sharding).
    align = 16 if mm_dtype == jnp.bfloat16 else 8
    tb_eff = max(align, min(tb, _round_up(B, align)))
    if _round_up(B, tb_eff) == tb_eff and tb_eff >= 2 * align:
        tb_eff = _round_up(tb_eff // 2, align)
    Bp = _round_up(B, tb_eff)

    xp = x.astype(mm_dtype)                       # cast BEFORE padding
    if Bp != B:
        xp = jnp.pad(xp, ((0, Bp - B), (0, 0)))

    try:
        out = _forward(xp, w1c, b1c, w2ic, b2ic, tb_eff=tb_eff,
                       single_buffer_weights=True)
    except Exception:
        # TODO(synk): fallback for JAX versions without BlockSpec pipeline_mode
        # support; weights are then default double-buffered (fine at small F0/H).
        out = _forward(xp, w1c, b1c, w2ic, b2ic, tb_eff=tb_eff,
                       single_buffer_weights=False)

    if Bp == B and n_logits == Gdim:
        return out                                # no extra slice copy
    return out[:B, :n_logits]


if __name__ == "__main__":
    # Small shapes consistent with the module:
    #   layer_types ~ [fiber=64, fiber=64], logits_max_freq=3 -> K=7, grid G=16
    B, F0, H = 16, 64, 64
    L = 3
    K = 1 + 2 * L
    G = 16

    key = jax.random.PRNGKey(0)
    kx, k1, k2, k3, k4 = jax.random.split(key, 5)

    x = jax.random.normal(kx, (B, F0), dtype=jnp.float32)
    w1 = jax.random.normal(k1, (F0, H), dtype=jnp.float32) / np.sqrt(F0)
    b1 = jax.random.normal(k2, (1, H), dtype=jnp.float32) * 0.01
    w2 = jax.random.normal(k3, (H, K), dtype=jnp.float32) / np.sqrt(H)
    b2 = jax.random.normal(k4, (1, K), dtype=jnp.float32) * 0.01
    ift = make_inverse_fourier_matrix(L, G)  # (K, G)

    # --- production path: bf16 operands, f32 accumulation -------------------
    params_bf16 = prepare_sym_view_pair_params(w1, b1, w2, b2, ift,
                                               use_bf16=True)
    out_bf16 = sym_view_pair_classifier_apply(x, params_bf16, n_logits=G)
    out_bf16 = jax.block_until_ready(out_bf16)
    assert out_bf16.shape == (B, G)

    # --- exact f32 path to validate semantics --------------------------------
    params_f32 = prepare_sym_view_pair_params(w1, b1, w2, b2, ift,
                                              use_bf16=False)
    out_f32 = sym_view_pair_classifier_apply(x, params_f32, n_logits=G)
    out_f32 = jax.block_until_ready(out_f32)
    assert out_f32.shape == (B, G)

    # Pure-JAX references.
    w2i = jnp.dot(w2, ift)            # (H, G)  fused weight (exact algebra)
    b2i = jnp.dot(b2, ift)            # (1, G)
    h_ref = jnp.maximum(x @ w1 + b1, 0.0)

    # Fusion is exact: (h @ W2 + b2) @ IFT == h @ (W2 @ IFT) + b2 @ IFT.
    logits_unfused = (h_ref @ w2 + b2) @ ift
    logits_fused = h_ref @ w2i + b2i
    np.testing.assert_allclose(np.asarray(logits_fused),
                               np.asarray(logits_unfused),
                               rtol=1e-4, atol=1e-4)

    # f32 kernel matches the f32 reference.
    np.testing.assert_allclose(np.asarray(out_f32), np.asarray(logits_fused),
                               rtol=1e-4, atol=1e-4)

    # bf16 kernel matches a reference with the same operand quantization
    # (bf16 operands, f32 accumulation).
    def _rt(a):  # round-trip through bfloat16
        return jnp.asarray(a).astype(jnp.bfloat16).astype(jnp.float32)

    h_q = jnp.maximum(_rt(x) @ _rt(w1) + b1, 0.0)
    logits_q = _rt(h_q) @ _rt(w2i) + b2i
    np.testing.assert_allclose(np.asarray(out_bf16), np.asarray(logits_q),
                               rtol=2e-2, atol=2e-2)

    print("KERNEL_OK")
</pallas_src>

<mosaic_0001>
module attributes {stable_mosaic.version = 11 : i64} {
  func.func @_classifier_kernel(%arg0: i32, %arg1: memref<16x64xbf16, #tpu.memory_space<vmem>>, %arg2: memref<64x64xbf16, #tpu.memory_space<vmem>>, %arg3: memref<1x64xf32, #tpu.memory_space<vmem>>, %arg4: memref<64x16xbf16, #tpu.memory_space<vmem>>, %arg5: memref<1x16xf32, #tpu.memory_space<vmem>>, %arg6: memref<16x16xf32, #tpu.memory_space<vmem>>) attributes {dimension_semantics = [#tpu.dimension_semantics<parallel>], iteration_bounds = array<i64: 1>, scalar_prefetch = 0 : i64, scratch_operands = 0 : i64, tpu.core_type = #tpu.core_type<tc>, window_params = [{transform_indices = @transform_0, window_bounds = array<i64: 16, 64>}, {pipeline_mode = #tpu.pipeline_mode<synchronous>, transform_indices = @transform_1, window_bounds = array<i64: 64, 64>}, {pipeline_mode = #tpu.pipeline_mode<synchronous>, transform_indices = @transform_2, window_bounds = array<i64: 1, 64>}, {pipeline_mode = #tpu.pipeline_mode<synchronous>, transform_indices = @transform_3, window_bounds = array<i64: 64, 16>}, {pipeline_mode = #tpu.pipeline_mode<synchronous>, transform_indices = @transform_4, window_bounds = array<i64: 1, 16>}, {transform_indices = @transform_5, window_bounds = array<i64: 16, 16>}]} {
    %c0 = arith.constant 0 : index
    %c0_0 = arith.constant 0 : index
    %0 = vector.load %arg1[%c0, %c0_0] : memref<16x64xbf16, #tpu.memory_space<vmem>>, vector<16x64xbf16>
    %c0_1 = arith.constant 0 : index
    %c0_2 = arith.constant 0 : index
    %1 = vector.load %arg2[%c0_1, %c0_2] : memref<64x64xbf16, #tpu.memory_space<vmem>>, vector<64x64xbf16>
    %cst = arith.constant dense<0.000000e+00> : vector<16x64xf32>
    %2 = tpu.matmul %0, %1, %cst {dimension_numbers = #tpu.dot_dimension_numbers<[1], [0], [0], [1], [0, 0, 1, 1], [], []>} : vector<16x64xbf16>, vector<64x64xbf16>, vector<16x64xf32> -> vector<16x64xf32>
    %c0_3 = arith.constant 0 : index
    %c0_4 = arith.constant 0 : index
    %3 = vector.load %arg3[%c0_3, %c0_4] : memref<1x64xf32, #tpu.memory_space<vmem>>, vector<1x64xf32>
    %4 = vector.broadcast %3 : vector<1x64xf32> to vector<16x64xf32>
    %5 = arith.addf %2, %4 : vector<16x64xf32>
    %cst_5 = arith.constant 0.000000e+00 : f32
    %6 = vector.broadcast %cst_5 : f32 to vector<16x64xf32>
    %7 = arith.maximumf %5, %6 : vector<16x64xf32>
    %8 = arith.truncf %7 : vector<16x64xf32> to vector<16x64xbf16>
    %c0_6 = arith.constant 0 : index
    %c0_7 = arith.constant 0 : index
    %9 = vector.load %arg4[%c0_6, %c0_7] : memref<64x16xbf16, #tpu.memory_space<vmem>>, vector<64x16xbf16>
    %cst_8 = arith.constant dense<0.000000e+00> : vector<16x16xf32>
    %10 = tpu.matmul %8, %9, %cst_8 {dimension_numbers = #tpu.dot_dimension_numbers<[1], [0], [0], [1], [0, 0, 1, 1], [], []>} : vector<16x64xbf16>, vector<64x16xbf16>, vector<16x16xf32> -> vector<16x16xf32>
    %c0_9 = arith.constant 0 : index
    %c0_10 = arith.constant 0 : index
    %11 = vector.load %arg5[%c0_9, %c0_10] : memref<1x16xf32, #tpu.memory_space<vmem>>, vector<1x16xf32>
    %12 = vector.broadcast %11 : vector<1x16xf32> to vector<16x16xf32>
    %13 = arith.addf %10, %12 : vector<16x16xf32>
    %c0_11 = arith.constant 0 : index
    %c0_12 = arith.constant 0 : index
    %14 = vector.load %arg6[%c0_11, %c0_12] : memref<16x16xf32, #tpu.memory_space<vmem>>, vector<16x16xf32>
    tpu.vector_store %arg6[%c0_11, %c0_12], %13 {strides = array<i32>} : memref<16x16xf32, #tpu.memory_space<vmem>>, vector<16x16xf32>,
    return
  }
  func.func @transform_0(%arg0: i32) -> (i32, i32) {
    %c0_i32 = arith.constant 0 : i32
    %c0_i32_0 = arith.constant 0 : i32
    return %arg0, %c0_i32 : i32, i32
  }
  func.func @transform_1(%arg0: i32) -> (i32, i32) {
    %c0_i32 = arith.constant 0 : i32
    %c0_i32_0 = arith.constant 0 : i32
    %c0_i32_1 = arith.constant 0 : i32
    return %c0_i32, %c0_i32_0 : i32, i32
  }
  func.func @transform_2(%arg0: i32) -> (i32, i32) {
    %c0_i32 = arith.constant 0 : i32
    %c0_i32_0 = arith.constant 0 : i32
    %c0_i32_1 = arith.constant 0 : i32
    return %c0_i32, %c0_i32_0 : i32, i32
  }
  func.func @transform_3(%arg0: i32) -> (i32, i32) {
    %c0_i32 = arith.constant 0 : i32
    %c0_i32_0 = arith.constant 0 : i32
    %c0_i32_1 = arith.constant 0 : i32
    return %c0_i32, %c0_i32_0 : i32, i32
  }
  func.func @transform_4(%arg0: i32) -> (i32, i32) {
    %c0_i32 = arith.constant 0 : i32
    %c0_i32_0 = arith.constant 0 : i32
    %c0_i32_1 = arith.constant 0 : i32
    return %c0_i32, %c0_i32_0 : i32, i32
  }
  func.func @transform_5(%arg0: i32) -> (i32, i32) {
    %c0_i32 = arith.constant 0 : i32
    %c0_i32_0 = arith.constant 0 : i32
    return %arg0, %c0_i32 : i32, i32
  }
}

module attributes {stable_mosaic.version = 11 : i64} {
  func.func @_classifier_kernel(%arg0: i32, %arg1: memref<16x64xbf16, #tpu.memory_space<vmem>>, %arg2: memref<64x64xbf16, #tpu.memory_space<vmem>>, %arg3: memref<1x64xf32, #tpu.memory_space<vmem>>, %arg4: memref<64x16xbf16, #tpu.memory_space<vmem>>, %arg5: memref<1x16xf32, #tpu.memory_space<vmem>>, %arg6: memref<16x16xf32, #tpu.memory_space<vmem>>) attributes {dimension_semantics = [#tpu.dimension_semantics<parallel>], iteration_bounds = array<i64: 1>, scalar_prefetch = 0 : i64, scratch_operands = 0 : i64, tpu.core_type = #tpu.core_type<tc>, window_params = [{transform_indices = @transform_0, window_bounds = array<i64: 16, 64>}, {pipeline_mode = #tpu.pipeline_mode<synchronous>, transform_indices = @transform_1, window_bounds = array<i64: 64, 64>}, {pipeline_mode = #tpu.pipeline_mode<synchronous>, transform_indices = @transform_2, window_bounds = array<i64: 1, 64>}, {pipeline_mode = #tpu.pipeline_mode<synchronous>, transform_indices = @transform_3, window_bounds = array<i64: 64, 16>}, {pipeline_mode = #tpu.pipeline_mode<synchronous>, transform_indices = @transform_4, window_bounds = array<i64: 1, 16>}, {transform_indices = @transform_5, window_bounds = array<i64: 16, 16>}]} {
    %c0 = arith.constant 0 : index
    %c0_0 = arith.constant 0 : index
    %0 = vector.load %arg1[%c0, %c0_0] : memref<16x64xbf16, #tpu.memory_space<vmem>>, vector<16x64xbf16>
    %c0_1 = arith.constant 0 : index
    %c0_2 = arith.constant 0 : index
    %1 = vector.load %arg2[%c0_1, %c0_2] : memref<64x64xbf16, #tpu.memory_space<vmem>>, vector<64x64xbf16>
    %cst = arith.constant dense<0.000000e+00> : vector<16x64xf32>
    %2 = tpu.matmul %0, %1, %cst {dimension_numbers = #tpu.dot_dimension_numbers<[1], [0], [0], [1], [0, 0, 1, 1], [], []>} : vector<16x64xbf16>, vector<64x64xbf16>, vector<16x64xf32> -> vector<16x64xf32>
    %c0_3 = arith.constant 0 : index
    %c0_4 = arith.constant 0 : index
    %3 = vector.load %arg3[%c0_3, %c0_4] : memref<1x64xf32, #tpu.memory_space<vmem>>, vector<1x64xf32>
    %4 = vector.broadcast %3 : vector<1x64xf32> to vector<16x64xf32>
    %5 = arith.addf %2, %4 : vector<16x64xf32>
    %cst_5 = arith.constant 0.000000e+00 : f32
    %6 = vector.broadcast %cst_5 : f32 to vector<16x64xf32>
    %7 = arith.maximumf %5, %6 : vector<16x64xf32>
    %8 = arith.truncf %7 : vector<16x64xf32> to vector<16x64xbf16>
    %c0_6 = arith.constant 0 : index
    %c0_7 = arith.constant 0 : index
    %9 = vector.load %arg4[%c0_6, %c0_7] : memref<64x16xbf16, #tpu.memory_space<vmem>>, vector<64x16xbf16>
    %cst_8 = arith.constant dense<0.000000e+00> : vector<16x16xf32>
    %10 = tpu.matmul %8, %9, %cst_8 {dimension_numbers = #tpu.dot_dimension_numbers<[1], [0], [0], [1], [0, 0, 1, 1], [], []>} : vector<16x64xbf16>, vector<64x16xbf16>, vector<16x16xf32> -> vector<16x16xf32>
    %c0_9 = arith.constant 0 : index
    %c0_10 = arith.constant 0 : index
    %11 = vector.load %arg5[%c0_9, %c0_10] : memref<1x16xf32, #tpu.memory_space<vmem>>, vector<1x16xf32>
    %12 = vector.broadcast %11 : vector<1x16xf32> to vector<16x16xf32>
    %13 = arith.addf %10, %12 : vector<16x16xf32>
    %c0_11 = arith.constant 0 : index
    %c0_12 = arith.constant 0 : index
    %14 = vector.load %arg6[%c0_11, %c0_12] : memref<16x16xf32, #tpu.memory_space<vmem>>, vector<16x16xf32>
    tpu.vector_store %arg6[%c0_11, %c0_12], %13 {strides = array<i32>} : memref<16x16xf32, #tpu.memory_space<vmem>>, vector<16x16xf32>,
    return
  }
  func.func @transform_0(%arg0: i32) -> (i32, i32) {
    %c0_i32 = arith.constant 0 : i32
    %c0_i32_0 = arith.constant 0 : i32
    return %arg0, %c0_i32 : i32, i32
  }
  func.func @transform_1(%arg0: i32) -> (i32, i32) {
    %c0_i32 = arith.constant 0 : i32
    %c0_i32_0 = arith.constant 0 : i32
    %c0_i32_1 = arith.constant 0 : i32
    return %c0_i32, %c0_i32_0 : i32, i32
  }
  func.func @transform_2(%arg0: i32) -> (i32, i32) {
    %c0_i32 = arith.constant 0 : i32
    %c0_i32_0 = arith.constant 0 : i32
    %c0_i32_1 = arith.constant 0 : i32
    return %c0_i32, %c0_i32_0 : i32, i32
  }
  func.func @transform_3(%arg0: i32) -> (i32, i32) {
    %c0_i32 = arith.constant 0 : i32
    %c0_i32_0 = arith.constant 0 : i32
    %c0_i32_1 = arith.constant 0 : i32
    return %c0_i32, %c0_i32_0 : i32, i32
  }
  func.func @transform_4(%arg0: i32) -> (i32, i32) {
    %c0_i32 = arith.constant 0 : i32
    %c0_i32_0 = arith.constant 0 : i32
    %c0_i32_1 = arith.constant 0 : i32
    return %c0_i32, %c0_i32_0 : i32, i32
  }
  func.func @transform_5(%arg0: i32) -> (i32, i32) {
    %c0_i32 = arith.constant 0 : i32
    %c0_i32_0 = arith.constant 0 : i32
    return %arg0, %c0_i32 : i32, i32
  }
}

</mosaic_0001>

<bundles_post_ra>
// kernel: tpu_custom_call.1
= control target key start
LH: loop header
LB: loop body
LE: loop exit
PB: predicated region body
PF: predicated region fallthrough
CT: control target
= control target key end

     0   :  { %v303_v1 = vmov 0.0   ;;  %vm304_vm0 = vmmov 0   ;;  %s385_s0 = inlined_call_operand.vmem [shape: bf16[16,64], index: 0, kind: input, shape index: {}]   ;;  %s386_s1 = inlined_call_operand.vmem [shape: bf16[64,64], index: 1, kind: input, shape index: {}]   ;;  %s387_s2 = inlined_call_operand.vmem [shape: f32[1,64], index: 2, kind: input, shape index: {}]   ;;  %s388_s3 = inlined_call_operand.vmem [shape: bf16[64,16], index: 3, kind: input, shape index: {}]   ;;  %s389_s4 = inlined_call_operand.vmem [shape: f32[1,16], index: 4, kind: input, shape index: {}]   ;;  %s390_s5 = inlined_call_operand.hbm [shape: f32[16,16], index: 5, kind: output, shape index: {}]  }
   0x1   :  { %v270_v0 = vld [vmem:[%s386_s1] sm:$0xff]   ;;  %241 = vmatprep.subr.bf16.mxu0 %v303_v1  ;;  %253 = vmatprep.subr.bf16.mxu1 %v303_v1  ;;  %v271_v2 = vld [vmem:[%s386_s1 + $0x8] sm:$0xff]   ;;  %v272_v4 = vld [vmem:[%s386_s1 + $0x10] sm:$0xff]  }
   0x2   :  { %242 = vmatpush3.bf16.msra.mxu0 %v270_v0  ;;  %249 = vmatprep.mubr.msk.bf16.mxu0 %vm304_vm0, %v303_v1  ;;  %v275_v3 = vld [vmem:[%s388_s3] sm:$0xff]   ;;  %v276_v5 = vld [vmem:[%s388_s3 + $0x8] sm:$0xff]  }
   0x3   :  { %243 = vmatprep.subr.bf16.mxu0 %v303_v1  ;;  %261 = vmatprep.mubr.msk.bf16.mxu1 %vm304_vm0, %v303_v1 }
   0x4   :  { %254 = vmatpush3.bf16.msra.mxu1 %v275_v3 }
   0x5   :  { %255 = vmatprep.subr.bf16.mxu1 %v303_v1 }
   0x6   :  { %244 = vmatpush3.bf16.msra.mxu0 %v271_v2 }
   0x7   :  { %245 = vmatprep.subr.bf16.mxu0 %v303_v1 }
   0x8   :  { %10 = vsyncpa [#allocation3], 0  ;;  %v273_v6 = vld [vmem:[%s386_s1 + $0x18] sm:$0xff]   ;;  %256 = vmatpush3.bf16.msra.mxu1 %v276_v5  ;;  %v274_v7 = vld [vmem:[%s385_s0] sm:$0xff]   ;;  %vm68_vm1 = vcmask 523264   ;;  %vm199_vm2 = vcmask 130048  }
   0x9   :  { %257 = vmatprep.subr.bf16.mxu1 %v303_v1  ;;  %v277_v8 = vld [vmem:[%s388_s3 + $0x10] sm:$0xff]   ;;  %v278_v9 = vld [vmem:[%s388_s3 + $0x18] sm:$0xff]   ;;  %v218_v10 = vld [vmem:[%s387_s2] ss:$0 sm:$0xff]  ;;  %s305_s3 = smov [#allocation2]  }
   0xa   :  { %246 = vmatpush3.bf16.msra.mxu0 %v272_v4  ;;  %v225_v20 = vld [vmem:[%s389_s4] ss:$0 sm:$0xff]  ;;  %s207_s13 = sshll.u32 %s305_s3, 4  ;;  %s208_s13 = int_to_ptr.vmem [resolvable:$true] %s207_s13 }
   0xb   :  { %247 = vmatprep.subr.bf16.mxu0 %v303_v1  ;;  %s279_s2 = scalar_lea.vmem %s208_s13, 256  ;;  %p284_p1 = scmp.lt.s32.totalorder %s208_s13, %s208_s13 }
   0xc   :  { %258 = vmatpush3.bf16.msra.mxu1 %v277_v8  ;;  %p280_p0 = scmp.ne.s32.totalorder %s208_s13, %s279_s2  ;;  %p285_p2 = scmp.lt.s32.totalorder %s279_s2, %s279_s2 }
   0xd   :  { %259 = vmatprep.subr.bf16.mxu1 %v303_v1 }
   0xe   :  { %248 = vmatpush3.bf16.msra.mxu0 %v273_v6  ;;  %p286_p3 = por %p285_p2, %p284_p1 }
  0x10   :  { %260 = vmatpush3.bf16.msra.mxu1 %v278_v9  ;;  %p287_p4 = pnand %p286_p3, %p280_p0 }
  0x11   :  { %250 = vmatmul.mubr.msk.bf16.vlgmr.msra.gmra.mrb[0].mxu0 %vm68_vm1, %v274_v7 }
  0xe4   :  { %v106_v11 = vpop.f32.mrb[0].mxu0 }
  0xe5   :  { %v107_v12 = vadd.f32 %v218_v10, %v106_v11  ;;  %v251_v13 = vpop.f32.mrb[1].mxu0 }
  0xe6   :  { %v109_v14 = vpop.f32.mrb[2].mxu0 }
  0xe7   :  { %v110_v15 = vadd.f32 %v218_v10, %v109_v14  ;;  %v252_v16 = vpop.f32.mrb[3].mxu0  ;;  %v113_v17 = vmax.f32 %v107_v12, 0.0 }
  0xe9   :  { %v114_v18 = vmax.f32 %v110_v15, 0.0 }
  0xeb   :  { %v115_v19 = vpack.c.bf16 %v114_v18, %v113_v17 }
  0xed   :  { %262 = vmatmul.mubr.msk.bf16.vlgmr.msra.gmra.mrb[0].mxu1 %vm68_vm1, %v115_v19 }
 0x1c0   :  { %v192_v21 = vpop.f32.mrb[0].mxu1 }
 0x1c1   :  { %v193_v22 = vadd.f32 %v225_v20, %v192_v21  ;;  %v263_v23 = vpop.f32.mrb[1].mxu1 }
 0x1c2   :  { %v195_v24 = vpop.f32.mrb[2].mxu1 }
 0x1c3   :  { %200 = vst.msk [vmem:[#allocation2] sm:$0xff] %vm199_vm2, %v193_v22  ;;  %v196_v25 = vadd.f32 %v225_v20, %v195_v24  ;;  %v264_v26 = vpop.f32.mrb[3].mxu1 }
 0x1c5   :  { %201 = vst.msk [vmem:[#allocation2 + $0x8] sm:$0xff] %vm199_vm2, %v196_v25 }
 0x1c6   :  { %290 = shalt.err (!%p287_p4)
}
 0x1c7   :  { %s291_s15 = scalar_lea.hbm %s390_s5, 256 }
 0x1c8   :  { %p292_p5 = scmp.ne.s32.totalorder %s390_s5, %s291_s15  ;;  %p295_p6 = scmp.lt.u32.totalorder %s291_s15, %s390_s5 }
 0x1ca   :  { %p297_p7 = pnand %p295_p6, %p292_p5 }
 0x1cc   :  { %300 = shalt.err (!%p297_p7)
}
 0x1cd   :  { %s306_s20 = smov 128   ;;  %s307_s21 = smov 8  }
 0x1ce   :  { %213 = dma.vmem_to_hbm [thread:$0]  %s208_s13, 256, %s390_s5, [#allocation3], %s306_s20, %s306_s20, %s307_s21  }
 0x1cf   :  { %301 = dma.done.wait [#allocation3], 256  }
 0x1d0   :  { %302 = vsyncadd [#allocation3], 4294967040 }
 0x1d1   :  { %217 = vsyncpa [#allocation3], 1 }

// kernel: tpu_custom_call.1
= control target key start
LH: loop header
LB: loop body
LE: loop exit
PB: predicated region body
PF: predicated region fallthrough
CT: control target
= control target key end

     0   :  { %v303_v1 = vmov 0.0   ;;  %vm304_vm0 = vmmov 0   ;;  %s385_s0 = inlined_call_operand.vmem [shape: bf16[16,64], index: 0, kind: input, shape index: {}]   ;;  %s386_s1 = inlined_call_operand.vmem [shape: bf16[64,64], index: 1, kind: input, shape index: {}]   ;;  %s387_s2 = inlined_call_operand.vmem [shape: f32[1,64], index: 2, kind: input, shape index: {}]   ;;  %s388_s3 = inlined_call_operand.vmem [shape: bf16[64,16], index: 3, kind: input, shape index: {}]   ;;  %s389_s4 = inlined_call_operand.vmem [shape: f32[1,16], index: 4, kind: input, shape index: {}]   ;;  %s390_s5 = inlined_call_operand.hbm [shape: f32[16,16], index: 5, kind: output, shape index: {}]  }
   0x1   :  { %v270_v0 = vld [vmem:[%s386_s1] sm:$0xff]   ;;  %241 = vmatprep.subr.bf16.mxu0 %v303_v1  ;;  %253 = vmatprep.subr.bf16.mxu1 %v303_v1  ;;  %v271_v2 = vld [vmem:[%s386_s1 + $0x8] sm:$0xff]   ;;  %v272_v4 = vld [vmem:[%s386_s1 + $0x10] sm:$0xff]  }
   0x2   :  { %242 = vmatpush3.bf16.msra.mxu0 %v270_v0  ;;  %249 = vmatprep.mubr.msk.bf16.mxu0 %vm304_vm0, %v303_v1  ;;  %v275_v3 = vld [vmem:[%s388_s3] sm:$0xff]   ;;  %v276_v5 = vld [vmem:[%s388_s3 + $0x8] sm:$0xff]  }
   0x3   :  { %243 = vmatprep.subr.bf16.mxu0 %v303_v1  ;;  %261 = vmatprep.mubr.msk.bf16.mxu1 %vm304_vm0, %v303_v1 }
   0x4   :  { %254 = vmatpush3.bf16.msra.mxu1 %v275_v3 }
   0x5   :  { %255 = vmatprep.subr.bf16.mxu1 %v303_v1 }
   0x6   :  { %244 = vmatpush3.bf16.msra.mxu0 %v271_v2 }
   0x7   :  { %245 = vmatprep.subr.bf16.mxu0 %v303_v1 }
   0x8   :  { %10 = vsyncpa [#allocation3], 0  ;;  %v273_v6 = vld [vmem:[%s386_s1 + $0x18] sm:$0xff]   ;;  %256 = vmatpush3.bf16.msra.mxu1 %v276_v5  ;;  %v274_v7 = vld [vmem:[%s385_s0] sm:$0xff]   ;;  %vm68_vm1 = vcmask 523264   ;;  %vm199_vm2 = vcmask 130048  }
   0x9   :  { %257 = vmatprep.subr.bf16.mxu1 %v303_v1  ;;  %v277_v8 = vld [vmem:[%s388_s3 + $0x10] sm:$0xff]   ;;  %v278_v9 = vld [vmem:[%s388_s3 + $0x18] sm:$0xff]   ;;  %v218_v10 = vld [vmem:[%s387_s2] ss:$0 sm:$0xff]  ;;  %s305_s3 = smov [#allocation2]  }
   0xa   :  { %246 = vmatpush3.bf16.msra.mxu0 %v272_v4  ;;  %v225_v20 = vld [vmem:[%s389_s4] ss:$0 sm:$0xff]  ;;  %s207_s13 = sshll.u32 %s305_s3, 4  ;;  %s208_s13 = int_to_ptr.vmem [resolvable:$true] %s207_s13 }
   0xb   :  { %247 = vmatprep.subr.bf16.mxu0 %v303_v1  ;;  %s279_s2 = scalar_lea.vmem %s208_s13, 256  ;;  %p284_p1 = scmp.lt.s32.totalorder %s208_s13, %s208_s13 }
   0xc   :  { %258 = vmatpush3.bf16.msra.mxu1 %v277_v8  ;;  %p280_p0 = scmp.ne.s32.totalorder %s208_s13, %s279_s2  ;;  %p285_p2 = scmp.lt.s32.totalorder %s279_s2, %s279_s2 }
   0xd   :  { %259 = vmatprep.subr.bf16.mxu1 %v303_v1 }
   0xe   :  { %248 = vmatpush3.bf16.msra.mxu0 %v273_v6  ;;  %p286_p3 = por %p285_p2, %p284_p1 }
  0x10   :  { %260 = vmatpush3.bf16.msra.mxu1 %v278_v9  ;;  %p287_p4 = pnand %p286_p3, %p280_p0 }
  0x11   :  { %250 = vmatmul.mubr.msk.bf16.vlgmr.msra.gmra.mrb[0].mxu0 %vm68_vm1, %v274_v7 }
  0xe4   :  { %v106_v11 = vpop.f32.mrb[0].mxu0 }
  0xe5   :  { %v107_v12 = vadd.f32 %v218_v10, %v106_v11  ;;  %v251_v13 = vpop.f32.mrb[1].mxu0 }
  0xe6   :  { %v109_v14 = vpop.f32.mrb[2].mxu0 }
  0xe7   :  { %v110_v15 = vadd.f32 %v218_v10, %v109_v14  ;;  %v252_v16 = vpop.f32.mrb[3].mxu0  ;;  %v113_v17 = vmax.f32 %v107_v12, 0.0 }
  0xe9   :  { %v114_v18 = vmax.f32 %v110_v15, 0.0 }
  0xeb   :  { %v115_v19 = vpack.c.bf16 %v114_v18, %v113_v17 }
  0xed   :  { %262 = vmatmul.mubr.msk.bf16.vlgmr.msra.gmra.mrb[0].mxu1 %vm68_vm1, %v115_v19 }
 0x1c0   :  { %v192_v21 = vpop.f32.mrb[0].mxu1 }
 0x1c1   :  { %v193_v22 = vadd.f32 %v225_v20, %v192_v21  ;;  %v263_v23 = vpop.f32.mrb[1].mxu1 }
 0x1c2   :  { %v195_v24 = vpop.f32.mrb[2].mxu1 }
 0x1c3   :  { %200 = vst.msk [vmem:[#allocation2] sm:$0xff] %vm199_vm2, %v193_v22  ;;  %v196_v25 = vadd.f32 %v225_v20, %v195_v24  ;;  %v264_v26 = vpop.f32.mrb[3].mxu1 }
 0x1c5   :  { %201 = vst.msk [vmem:[#allocation2 + $0x8] sm:$0xff] %vm199_vm2, %v196_v25 }
 0x1c6   :  { %290 = shalt.err (!%p287_p4)
}
 0x1c7   :  { %s291_s15 = scalar_lea.hbm %s390_s5, 256 }
 0x1c8   :  { %p292_p5 = scmp.ne.s32.totalorder %s390_s5, %s291_s15  ;;  %p295_p6 = scmp.lt.u32.totalorder %s291_s15, %s390_s5 }
 0x1ca   :  { %p297_p7 = pnand %p295_p6, %p292_p5 }
 0x1cc   :  { %300 = shalt.err (!%p297_p7)
}
 0x1cd   :  { %s306_s20 = smov 128   ;;  %s307_s21 = smov 8  }
 0x1ce   :  { %213 = dma.vmem_to_hbm [thread:$0]  %s208_s13, 256, %s390_s5, [#allocation3], %s306_s20, %s306_s20, %s307_s21  }
 0x1cf   :  { %301 = dma.done.wait [#allocation3], 256  }
 0x1d0   :  { %302 = vsyncadd [#allocation3], 4294967040 }
 0x1d1   :  { %217 = vsyncpa [#allocation3], 1 }

</bundles_post_ra>
